<compile_context>
chip_gen: v5e
topology: v5e:2x2
jax: 0.10.0
libtpu: 0.0.40
codegen_flags: <defaults>
</compile_context>

<pallas_src>
import jax
import jax.numpy as jnp
from jax import lax
from jax.experimental import pallas as pl
from jax.experimental.pallas import tpu as pltpu

# ----------------------------- config (small) -------------------------------
SEQ = 8
HIDDEN = 32                 # true hidden size (word_embed_proj_dim == hidden)
HIDDEN_PAD = 128            # lane-padded hidden width used inside the kernel
NUM_HEADS = 4
HEAD_DIM = HIDDEN // NUM_HEADS
FFN = 128
VOCAB = 64
MAX_POS = 32
NUM_LAYERS = 2
LN_EPS = 1e-5
SCALE = HEAD_DIM ** -0.5
POS_OFFSET = 2              # OPTLearnedPositionalEmbedding offset
MASK_VALUE = float(jnp.finfo(jnp.float32).min) / 2.0   # dtype-aware -inf-ish


# ------------------------------ Pallas kernel -------------------------------
def _masked_layer_norm(h, w, b, lane_mask):
    """LayerNorm over the first HIDDEN lanes of a HIDDEN_PAD-wide activation.

    Pad lanes of `h` are zero by construction; `w`/`b` are zero in the pad
    lanes so the result stays zero there as well.
    """
    inv_d = 1.0 / HIDDEN
    mu = jnp.sum(h * lane_mask, axis=-1, keepdims=True) * inv_d
    diff = (h - mu) * lane_mask
    var = jnp.sum(diff * diff, axis=-1, keepdims=True) * inv_d
    return diff * lax.rsqrt(var + LN_EPS) * w + b


def fused_decoder_kernel(
        # constants across the layer grid (fetched once, stay VMEM resident)
        x_ref, mask_ref, lmask_ref, flnw_ref, flnb_ref,
        # per-layer stacked [L, ...] weights (layer l+1 prefetched by pipeline)
        ln1w_ref, ln1b_ref, wqkv_ref, bqkv_ref, wo_ref, bo_ref,
        ln2w_ref, ln2b_ref, w1_ref, b1_ref, w2_ref, b2_ref,
        # output + VMEM-resident residual stream
        out_ref, act_ref):
    l = pl.program_id(0)
    lane_mask = lmask_ref[...]                              # (1, HIDDEN_PAD)

    # Load the embeddings into the residual-stream scratch on step 0.
    @pl.when(l == 0)
    def _init():
        act_ref[...] = x_ref[...]

    x = act_ref[...]                                        # (S, HIDDEN_PAD) f32

    # --- self_attn_layer_norm (pre-LN; OPT do_layer_norm_before=True) ---
    h = _masked_layer_norm(x, ln1w_ref[0], ln1b_ref[0], lane_mask)

    # --- fused QKV projection: ONE lane-dense matmul with bf16 weights ---
    qkv = jnp.dot(h.astype(jnp.bfloat16), wqkv_ref[0],
                  preferred_element_type=jnp.float32) + bqkv_ref[0]  # (S, 3*HIDDEN)

    # --- per-head views (static lane slices stacked on a leading major axis) ---
    def heads(base):
        return jnp.stack(
            [qkv[:, base + i * HEAD_DIM: base + (i + 1) * HEAD_DIM]
             for i in range(NUM_HEADS)])                    # (H, S, Dh)

    q = heads(0)
    k = heads(HIDDEN)
    v = heads(2 * HIDDEN)

    # --- causal attention, batched over heads; softmax kept in f32 ---
    s = jnp.einsum("hqd,hkd->hqk", q, k,
                   preferred_element_type=jnp.float32) * SCALE       # (H, S, S)
    s = s + mask_ref[...][None]                             # additive causal mask
    m = jnp.max(s, axis=-1, keepdims=True)
    p = jnp.exp(s - m)
    p = p * pl.reciprocal(jnp.sum(p, axis=-1, keepdims=True), approx=True)
    o = jnp.einsum("hqk,hkd->hqd", p, v,
                   preferred_element_type=jnp.float32)                # (H, S, Dh)

    # --- out_proj: concat heads on lanes -> one (S,D)x(D,Dpad) matmul ---
    o_cat = jnp.concatenate([o[i] for i in range(NUM_HEADS)], axis=-1)  # (S, HIDDEN)
    x1 = x + jnp.dot(o_cat.astype(jnp.bfloat16), wo_ref[0],
                     preferred_element_type=jnp.float32) + bo_ref[0]

    # --- per-layer final_layer_norm + FC1 / ReLU / FC2 + residual ---
    h2 = _masked_layer_norm(x1, ln2w_ref[0], ln2b_ref[0], lane_mask)
    f = jnp.maximum(
        jnp.dot(h2.astype(jnp.bfloat16), w1_ref[0],
                preferred_element_type=jnp.float32) + b1_ref[0], 0.0)  # relu
    y = x1 + jnp.dot(f.astype(jnp.bfloat16), w2_ref[0],
                     preferred_element_type=jnp.float32) + b2_ref[0]

    act_ref[...] = y

    # Decoder-level final LayerNorm folded into the last grid step.
    @pl.when(l == pl.num_programs(0) - 1)
    def _finish():
        out_ref[...] = _masked_layer_norm(y, flnw_ref[...], flnb_ref[...],
                                          lane_mask)


# ------------------------------ BlockSpec helpers ----------------------------
def _const_spec(shape):
    # Same block every grid step -> DMA'd once, stays resident in VMEM.
    zeros = (0,) * len(shape)
    return pl.BlockSpec(tuple(shape), lambda l, _z=zeros: _z)


def _layer_spec(shape):
    # Stacked per-layer array [L, ...]; grid step l selects slice l.
    block = (1,) + tuple(shape[1:])
    zeros = (0,) * (len(shape) - 1)
    return pl.BlockSpec(block, lambda l, _z=zeros: (l,) + _z)


def run_fused_decoder(x, mask, lane_mask, fln_w, fln_b, layer_stack):
    const_inputs = (x, mask, lane_mask, fln_w, fln_b)
    in_specs = ([_const_spec(a.shape) for a in const_inputs]
                + [_layer_spec(a.shape) for a in layer_stack])
    S, DP = x.shape

    # Advisory cost estimate (helps XLA scheduling around the custom call).
    flops_layer = 2 * S * (HIDDEN_PAD * 3 * HIDDEN          # qkv
                           + 2 * NUM_HEADS * S * HEAD_DIM   # scores + pv
                           + HIDDEN * HIDDEN_PAD            # out_proj
                           + HIDDEN_PAD * FFN               # fc1
                           + FFN * HIDDEN_PAD)              # fc2
    bytes_accessed = (sum(int(a.size) * a.dtype.itemsize for a in const_inputs)
                      + sum(int(a.size) * a.dtype.itemsize for a in layer_stack)
                      + S * DP * 4)
    cost = pl.CostEstimate(flops=int(NUM_LAYERS * flops_layer),
                           transcendentals=int(NUM_LAYERS * NUM_HEADS * S * S),
                           bytes_accessed=int(bytes_accessed))

    return pl.pallas_call(
        fused_decoder_kernel,
        out_shape=jax.ShapeDtypeStruct((S, DP), jnp.float32),
        grid=(NUM_LAYERS,),
        in_specs=in_specs,
        out_specs=pl.BlockSpec((S, DP), lambda l: (0, 0)),
        scratch_shapes=[pltpu.VMEM((S, DP), jnp.float32)],
        compiler_params=pltpu.CompilerParams(
            dimension_semantics=("arbitrary",),      # sequential layer dependence
            vmem_limit_bytes=32 * 1024 * 1024),
        cost_estimate=cost,
    )(*const_inputs, *layer_stack)


# ------------------------- param stacking / relayout -------------------------
def _stack_layers(layers):
    L = len(layers)
    st = lambda name: jnp.stack([lp[name] for lp in layers])

    def pad_lanes(a, width=HIDDEN_PAD):
        return jnp.pad(a, [(0, 0)] * (a.ndim - 1) + [(0, width - a.shape[-1])])

    def pad_rows(a, rows=HIDDEN_PAD):         # pad the contraction dim
        pads = [(0, 0)] * a.ndim
        pads[-2] = (0, rows - a.shape[-2])
        return jnp.pad(a, pads)

    to_row = lambda a: a.reshape(L, 1, a.shape[-1])
    bf16 = jnp.bfloat16

    # LayerNorm affine params: zero-padded so pad lanes stay exactly zero.
    ln1w = pad_lanes(to_row(st("ln1_w")))
    ln1b = pad_lanes(to_row(st("ln1_b")))
    ln2w = pad_lanes(to_row(st("ln2_w")))
    ln2b = pad_lanes(to_row(st("ln2_b")))

    # Fused QKV weight kept lane-dense as (L, Dpad, 3D); contraction padded.
    wqkv = pad_rows(st("wqkv")).astype(bf16)            # (L, 128, 96)  bf16
    bqkv = to_row(st("bqkv"))                           # (L, 1, 96)    f32

    wout = pad_lanes(st("wout")).astype(bf16)           # (L, 32, 128)  bf16
    bout = pad_lanes(to_row(st("bout")))                # (L, 1, 128)   f32

    w1 = pad_rows(st("w1")).astype(bf16)                # (L, 128, 128) bf16
    b1 = to_row(st("b1"))                               # (L, 1, 128)   f32
    w2 = pad_lanes(st("w2")).astype(bf16)               # (L, 128, 128) bf16
    b2 = pad_lanes(to_row(st("b2")))                    # (L, 1, 128)   f32

    return (ln1w, ln1b, wqkv, bqkv, wout, bout, ln2w, ln2b, w1, b1, w2, b2)


# ------------------------------ model wrapper -------------------------------
def init_params(key):
    def normal(k, shape, std=0.02):
        return jax.random.normal(k, shape, jnp.float32) * std

    keys = iter(jax.random.split(key, 2 + NUM_LAYERS * 8))
    params = {
        "embed_tokens": normal(next(keys), (VOCAB, HIDDEN)),
        "embed_positions": normal(next(keys), (MAX_POS + POS_OFFSET, HIDDEN)),
        "final_ln_w": jnp.ones((HIDDEN,), jnp.float32),
        "final_ln_b": jnp.zeros((HIDDEN,), jnp.float32),
        "layers": [],
    }
    for _ in range(NUM_LAYERS):
        params["layers"].append({
            "ln1_w": jnp.ones((HIDDEN,), jnp.float32),
            "ln1_b": jnp.zeros((HIDDEN,), jnp.float32),
            "wqkv": normal(next(keys), (HIDDEN, 3 * HIDDEN)),
            "bqkv": normal(next(keys), (3 * HIDDEN,)),
            "wout": normal(next(keys), (HIDDEN, HIDDEN)),
            "bout": normal(next(keys), (HIDDEN,)),
            "ln2_w": jnp.ones((HIDDEN,), jnp.float32),
            "ln2_b": jnp.zeros((HIDDEN,), jnp.float32),
            "w1": normal(next(keys), (HIDDEN, FFN)),
            "b1": normal(next(keys), (FFN,)),
            "w2": normal(next(keys), (FFN, HIDDEN)),
            "b2": normal(next(keys), (HIDDEN,)),
        })
    return params


@jax.jit
def opt_model_forward(input_ids, positions, params):
    # Embedding gathers are glue in plain JAX.  word_embed_proj_dim ==
    # hidden_size, so project_in / project_out are None in the reference module.
    tok = jnp.take(params["embed_tokens"], input_ids, axis=0)
    pos = jnp.take(params["embed_positions"], positions + POS_OFFSET, axis=0)
    hidden = (tok + pos).astype(jnp.float32)                     # (S, HIDDEN)
    S = hidden.shape[0]
    hidden = jnp.pad(hidden, ((0, 0), (0, HIDDEN_PAD - HIDDEN)))  # lane-dense

    row = jnp.arange(S)[:, None]
    col = jnp.arange(S)[None, :]
    mask = jnp.where(col <= row, 0.0, MASK_VALUE).astype(jnp.float32)   # (S, S)

    lane_mask = (jnp.arange(HIDDEN_PAD) < HIDDEN).astype(jnp.float32)
    lane_mask = lane_mask.reshape(1, HIDDEN_PAD)

    fln_w = jnp.pad(params["final_ln_w"], (0, HIDDEN_PAD - HIDDEN)).reshape(1, -1)
    fln_b = jnp.pad(params["final_ln_b"], (0, HIDDEN_PAD - HIDDEN)).reshape(1, -1)

    layer_stack = _stack_layers(params["layers"])
    out = run_fused_decoder(hidden, mask, lane_mask, fln_w, fln_b, layer_stack)
    return out[:, :HIDDEN]


# ------------------------------ pure-JAX reference ---------------------------
def reference_forward(input_ids, positions, params):
    # Mirrors the kernel's precision policy: bf16 weights/activations feeding
    # the matmuls (f32 accumulation), f32 LayerNorm / softmax.
    def bdot(a, w):
        return jnp.dot(a.astype(jnp.bfloat16), w.astype(jnp.bfloat16),
                       preferred_element_type=jnp.float32)

    def ln(h, w, b):
        mu = jnp.mean(h, axis=-1, keepdims=True)
        var = jnp.mean((h - mu) ** 2, axis=-1, keepdims=True)
        return (h - mu) * lax.rsqrt(var + LN_EPS) * w + b

    tok = params["embed_tokens"][input_ids]
    pos = params["embed_positions"][positions + POS_OFFSET]
    x = (tok + pos).astype(jnp.float32)
    S = x.shape[0]
    causal = jnp.arange(S)[None, :] <= jnp.arange(S)[:, None]
    for lp in params["layers"]:
        h = ln(x, lp["ln1_w"], lp["ln1_b"])
        qkv = bdot(h, lp["wqkv"]) + lp["bqkv"]
        q, k, v = jnp.split(qkv, 3, axis=-1)
        q = q.reshape(S, NUM_HEADS, HEAD_DIM).transpose(1, 0, 2)
        k = k.reshape(S, NUM_HEADS, HEAD_DIM).transpose(1, 0, 2)
        v = v.reshape(S, NUM_HEADS, HEAD_DIM).transpose(1, 0, 2)
        s = jnp.einsum("hqd,hkd->hqk", q, k) * SCALE
        s = jnp.where(causal[None], s, MASK_VALUE)
        p = jax.nn.softmax(s, axis=-1)
        a = jnp.einsum("hqk,hkd->hqd", p, v).transpose(1, 0, 2).reshape(S, HIDDEN)
        x = x + bdot(a, lp["wout"]) + lp["bout"]
        h2 = ln(x, lp["ln2_w"], lp["ln2_b"])
        f = jnp.maximum(bdot(h2, lp["w1"]) + lp["b1"], 0.0)
        x = x + bdot(f, lp["w2"]) + lp["b2"]
    return ln(x, params["final_ln_w"], params["final_ln_b"])


# ---------------------------------- main -------------------------------------
if __name__ == "__main__":
    key = jax.random.PRNGKey(0)
    pkey, ikey = jax.random.split(key)
    params = init_params(pkey)

    input_ids = jax.random.randint(ikey, (SEQ,), 0, VOCAB, dtype=jnp.int32)
    positions = jnp.arange(SEQ, dtype=jnp.int32)

    out = jax.block_until_ready(opt_model_forward(input_ids, positions, params))
    ref = reference_forward(input_ids, positions, params)

    assert out.shape == (SEQ, HIDDEN)
    # Tolerance covers the approx EUP reciprocal in the softmax denominator
    # and bf16-weight matmul accumulation-order differences.
    assert jnp.allclose(out, ref, atol=5e-3, rtol=5e-3), "mismatch vs reference"
    print("KERNEL_OK")
</pallas_src>

<mosaic_0001>
module attributes {stable_mosaic.version = 11 : i64} {
  func.func @fused_decoder_kernel(%arg0: i32, %arg1: memref<8x128xf32, #tpu.memory_space<vmem>>, %arg2: memref<8x8xf32, #tpu.memory_space<vmem>>, %arg3: memref<1x128xf32, #tpu.memory_space<vmem>>, %arg4: memref<1x128xf32, #tpu.memory_space<vmem>>, %arg5: memref<1x128xf32, #tpu.memory_space<vmem>>, %arg6: memref<1x1x128xf32, #tpu.memory_space<vmem>>, %arg7: memref<1x1x128xf32, #tpu.memory_space<vmem>>, %arg8: memref<1x128x96xbf16, #tpu.memory_space<vmem>>, %arg9: memref<1x1x96xf32, #tpu.memory_space<vmem>>, %arg10: memref<1x32x128xbf16, #tpu.memory_space<vmem>>, %arg11: memref<1x1x128xf32, #tpu.memory_space<vmem>>, %arg12: memref<1x1x128xf32, #tpu.memory_space<vmem>>, %arg13: memref<1x1x128xf32, #tpu.memory_space<vmem>>, %arg14: memref<1x128x128xbf16, #tpu.memory_space<vmem>>, %arg15: memref<1x1x128xf32, #tpu.memory_space<vmem>>, %arg16: memref<1x128x128xbf16, #tpu.memory_space<vmem>>, %arg17: memref<1x1x128xf32, #tpu.memory_space<vmem>>, %arg18: memref<8x128xf32, #tpu.memory_space<vmem>>, %arg19: memref<8x128xf32, #tpu.memory_space<vmem>>) attributes {dimension_semantics = [#tpu.dimension_semantics<arbitrary>], iteration_bounds = array<i64: 2>, scalar_prefetch = 0 : i64, scratch_operands = 1 : i64, tpu.core_type = #tpu.core_type<tc>, window_params = [{pipeline_mode = #tpu.pipeline_mode<synchronous>, transform_indices = @transform_0, window_bounds = array<i64: 8, 128>}, {pipeline_mode = #tpu.pipeline_mode<synchronous>, transform_indices = @transform_1, window_bounds = array<i64: 8, 8>}, {pipeline_mode = #tpu.pipeline_mode<synchronous>, transform_indices = @transform_2, window_bounds = array<i64: 1, 128>}, {pipeline_mode = #tpu.pipeline_mode<synchronous>, transform_indices = @transform_3, window_bounds = array<i64: 1, 128>}, {pipeline_mode = #tpu.pipeline_mode<synchronous>, transform_indices = @transform_4, window_bounds = array<i64: 1, 128>}, {transform_indices = @transform_5, window_bounds = array<i64: 1, 1, 128>}, {transform_indices = @transform_6, window_bounds = array<i64: 1, 1, 128>}, {transform_indices = @transform_7, window_bounds = array<i64: 1, 128, 96>}, {transform_indices = @transform_8, window_bounds = array<i64: 1, 1, 96>}, {transform_indices = @transform_9, window_bounds = array<i64: 1, 32, 128>}, {transform_indices = @transform_10, window_bounds = array<i64: 1, 1, 128>}, {transform_indices = @transform_11, window_bounds = array<i64: 1, 1, 128>}, {transform_indices = @transform_12, window_bounds = array<i64: 1, 1, 128>}, {transform_indices = @transform_13, window_bounds = array<i64: 1, 128, 128>}, {transform_indices = @transform_14, window_bounds = array<i64: 1, 1, 128>}, {transform_indices = @transform_15, window_bounds = array<i64: 1, 128, 128>}, {transform_indices = @transform_16, window_bounds = array<i64: 1, 1, 128>}, {pipeline_mode = #tpu.pipeline_mode<synchronous>, transform_indices = @transform_17, window_bounds = array<i64: 8, 128>}]} {
    %c0 = arith.constant 0 : index
    %c0_0 = arith.constant 0 : index
    %0 = vector.load %arg3[%c0, %c0_0] : memref<1x128xf32, #tpu.memory_space<vmem>>, vector<1x128xf32>
    %c0_i32 = arith.constant 0 : i32
    %1 = arith.cmpi eq, %arg0, %c0_i32 : i32
    %2 = arith.extui %1 : i1 to i32
    %c0_i32_1 = arith.constant 0 : i32
    %3 = arith.cmpi ne, %2, %c0_i32_1 : i32
    scf.if %3 {
      %c0_64 = arith.constant 0 : index
      %c0_65 = arith.constant 0 : index
      %155 = vector.load %arg1[%c0_64, %c0_65] : memref<8x128xf32, #tpu.memory_space<vmem>>, vector<8x128xf32>
      %c0_66 = arith.constant 0 : index
      %c0_67 = arith.constant 0 : index
      %156 = vector.load %arg19[%c0_66, %c0_67] : memref<8x128xf32, #tpu.memory_space<vmem>>, vector<8x128xf32>
      tpu.vector_store %arg19[%c0_66, %c0_67], %155 {strides = array<i32>} : memref<8x128xf32, #tpu.memory_space<vmem>>, vector<8x128xf32>,
    } else {
    }
    %c0_2 = arith.constant 0 : index
    %c0_3 = arith.constant 0 : index
    %4 = vector.load %arg19[%c0_2, %c0_3] : memref<8x128xf32, #tpu.memory_space<vmem>>, vector<8x128xf32>
    %c0_4 = arith.constant 0 : index
    %c0_5 = arith.constant 0 : index
    %c0_6 = arith.constant 0 : index
    %5 = vector.load %arg6[%c0_4, %c0_5, %c0_6] : memref<1x1x128xf32, #tpu.memory_space<vmem>>, vector<1x1x128xf32>
    %6 = vector.shape_cast %5 : vector<1x1x128xf32> to vector<1x128xf32>
    %c0_7 = arith.constant 0 : index
    %c0_8 = arith.constant 0 : index
    %c0_9 = arith.constant 0 : index
    %7 = vector.load %arg7[%c0_7, %c0_8, %c0_9] : memref<1x1x128xf32, #tpu.memory_space<vmem>>, vector<1x1x128xf32>
    %8 = vector.shape_cast %7 : vector<1x1x128xf32> to vector<1x128xf32>
    %9 = vector.broadcast %0 : vector<1x128xf32> to vector<8x128xf32>
    %10 = arith.mulf %4, %9 : vector<8x128xf32>
    %cst = arith.constant dense<0.000000e+00> : vector<8xf32>
    %11 = vector.multi_reduction <add>, %10, %cst [1] : vector<8x128xf32> to vector<8xf32>
    %12 = vector.shape_cast %11 : vector<8xf32> to vector<8x1xf32>
    %cst_10 = arith.constant 3.125000e-02 : f32
    %13 = vector.broadcast %cst_10 : f32 to vector<8x1xf32>
    %14 = arith.mulf %12, %13 : vector<8x1xf32>
    %15 = vector.broadcast %14 : vector<8x1xf32> to vector<8x128xf32>
    %16 = arith.subf %4, %15 : vector<8x128xf32>
    %17 = vector.broadcast %0 : vector<1x128xf32> to vector<8x128xf32>
    %18 = arith.mulf %16, %17 : vector<8x128xf32>
    %19 = arith.mulf %18, %18 : vector<8x128xf32>
    %cst_11 = arith.constant dense<0.000000e+00> : vector<8xf32>
    %20 = vector.multi_reduction <add>, %19, %cst_11 [1] : vector<8x128xf32> to vector<8xf32>
    %21 = vector.shape_cast %20 : vector<8xf32> to vector<8x1xf32>
    %cst_12 = arith.constant 3.125000e-02 : f32
    %22 = vector.broadcast %cst_12 : f32 to vector<8x1xf32>
    %23 = arith.mulf %21, %22 : vector<8x1xf32>
    %cst_13 = arith.constant 9.99999974E-6 : f32
    %24 = vector.broadcast %cst_13 : f32 to vector<8x1xf32>
    %25 = arith.addf %23, %24 : vector<8x1xf32>
    %26 = math.rsqrt %25 : vector<8x1xf32>
    %27 = vector.broadcast %26 : vector<8x1xf32> to vector<8x128xf32>
    %28 = arith.mulf %18, %27 : vector<8x128xf32>
    %29 = vector.broadcast %6 : vector<1x128xf32> to vector<8x128xf32>
    %30 = arith.mulf %28, %29 : vector<8x128xf32>
    %31 = vector.broadcast %8 : vector<1x128xf32> to vector<8x128xf32>
    %32 = arith.addf %30, %31 : vector<8x128xf32>
    %33 = arith.truncf %32 : vector<8x128xf32> to vector<8x128xbf16>
    %c0_14 = arith.constant 0 : index
    %c0_15 = arith.constant 0 : index
    %c0_16 = arith.constant 0 : index
    %34 = vector.load %arg8[%c0_14, %c0_15, %c0_16] : memref<1x128x96xbf16, #tpu.memory_space<vmem>>, vector<1x128x96xbf16>
    %35 = vector.shape_cast %34 : vector<1x128x96xbf16> to vector<128x96xbf16>
    %cst_17 = arith.constant dense<0.000000e+00> : vector<8x96xf32>
    %36 = tpu.matmul %33, %35, %cst_17 {dimension_numbers = #tpu.dot_dimension_numbers<[1], [0], [0], [1], [0, 0, 1, 1], [], []>} : vector<8x128xbf16>, vector<128x96xbf16>, vector<8x96xf32> -> vector<8x96xf32>
    %c0_18 = arith.constant 0 : index
    %c0_19 = arith.constant 0 : index
    %c0_20 = arith.constant 0 : index
    %37 = vector.load %arg9[%c0_18, %c0_19, %c0_20] : memref<1x1x96xf32, #tpu.memory_space<vmem>>, vector<1x1x96xf32>
    %38 = vector.shape_cast %37 : vector<1x1x96xf32> to vector<1x96xf32>
    %39 = vector.broadcast %38 : vector<1x96xf32> to vector<8x96xf32>
    %40 = arith.addf %36, %39 : vector<8x96xf32>
    %41 = vector.extract_strided_slice %40 {offsets = [0, 0], sizes = [8, 8], strides = [1, 1]} : vector<8x96xf32> to vector<8x8xf32>
    %42 = vector.extract_strided_slice %40 {offsets = [0, 8], sizes = [8, 8], strides = [1, 1]} : vector<8x96xf32> to vector<8x8xf32>
    %43 = vector.extract_strided_slice %40 {offsets = [0, 16], sizes = [8, 8], strides = [1, 1]} : vector<8x96xf32> to vector<8x8xf32>
    %44 = vector.extract_strided_slice %40 {offsets = [0, 24], sizes = [8, 8], strides = [1, 1]} : vector<8x96xf32> to vector<8x8xf32>
    %45 = vector.shape_cast %41 : vector<8x8xf32> to vector<1x8x8xf32>
    %46 = vector.shape_cast %42 : vector<8x8xf32> to vector<1x8x8xf32>
    %47 = vector.shape_cast %43 : vector<8x8xf32> to vector<1x8x8xf32>
    %48 = vector.shape_cast %44 : vector<8x8xf32> to vector<1x8x8xf32>
    %49 = tpu.concatenate %45, %46, %47, %48 in 0 : vector<1x8x8xf32>, vector<1x8x8xf32>, vector<1x8x8xf32>, vector<1x8x8xf32> -> vector<4x8x8xf32>
    %50 = vector.extract_strided_slice %40 {offsets = [0, 32], sizes = [8, 8], strides = [1, 1]} : vector<8x96xf32> to vector<8x8xf32>
    %51 = vector.extract_strided_slice %40 {offsets = [0, 40], sizes = [8, 8], strides = [1, 1]} : vector<8x96xf32> to vector<8x8xf32>
    %52 = vector.extract_strided_slice %40 {offsets = [0, 48], sizes = [8, 8], strides = [1, 1]} : vector<8x96xf32> to vector<8x8xf32>
    %53 = vector.extract_strided_slice %40 {offsets = [0, 56], sizes = [8, 8], strides = [1, 1]} : vector<8x96xf32> to vector<8x8xf32>
    %54 = vector.shape_cast %50 : vector<8x8xf32> to vector<1x8x8xf32>
    %55 = vector.shape_cast %51 : vector<8x8xf32> to vector<1x8x8xf32>
    %56 = vector.shape_cast %52 : vector<8x8xf32> to vector<1x8x8xf32>
    %57 = vector.shape_cast %53 : vector<8x8xf32> to vector<1x8x8xf32>
    %58 = tpu.concatenate %54, %55, %56, %57 in 0 : vector<1x8x8xf32>, vector<1x8x8xf32>, vector<1x8x8xf32>, vector<1x8x8xf32> -> vector<4x8x8xf32>
    %59 = vector.extract_strided_slice %40 {offsets = [0, 64], sizes = [8, 8], strides = [1, 1]} : vector<8x96xf32> to vector<8x8xf32>
    %60 = vector.extract_strided_slice %40 {offsets = [0, 72], sizes = [8, 8], strides = [1, 1]} : vector<8x96xf32> to vector<8x8xf32>
    %61 = vector.extract_strided_slice %40 {offsets = [0, 80], sizes = [8, 8], strides = [1, 1]} : vector<8x96xf32> to vector<8x8xf32>
    %62 = vector.extract_strided_slice %40 {offsets = [0, 88], sizes = [8, 8], strides = [1, 1]} : vector<8x96xf32> to vector<8x8xf32>
    %63 = vector.shape_cast %59 : vector<8x8xf32> to vector<1x8x8xf32>
    %64 = vector.shape_cast %60 : vector<8x8xf32> to vector<1x8x8xf32>
    %65 = vector.shape_cast %61 : vector<8x8xf32> to vector<1x8x8xf32>
    %66 = vector.shape_cast %62 : vector<8x8xf32> to vector<1x8x8xf32>
    %67 = tpu.concatenate %63, %64, %65, %66 in 0 : vector<1x8x8xf32>, vector<1x8x8xf32>, vector<1x8x8xf32>, vector<1x8x8xf32> -> vector<4x8x8xf32>
    "tpu.trace_start"() <{level = 10 : i32, message = "hqd,hkd->hqk"}> : () -> ()
    %cst_21 = arith.constant dense<0.000000e+00> : vector<4x8x8xf32>
    %68 = tpu.matmul %49, %58, %cst_21 {dimension_numbers = #tpu.dot_dimension_numbers<[2], [2], [1], [1], [0, 0, 0, 1, 1, 1], [0], [0]>} : vector<4x8x8xf32>, vector<4x8x8xf32>, vector<4x8x8xf32> -> vector<4x8x8xf32>
    "tpu.trace_stop"() : () -> ()
    %cst_22 = arith.constant 0.353553385 : f32
    %69 = vector.broadcast %cst_22 : f32 to vector<4x8x8xf32>
    %70 = arith.mulf %68, %69 : vector<4x8x8xf32>
    %c0_23 = arith.constant 0 : index
    %c0_24 = arith.constant 0 : index
    %71 = vector.load %arg2[%c0_23, %c0_24] : memref<8x8xf32, #tpu.memory_space<vmem>>, vector<8x8xf32>
    %72 = vector.shape_cast %71 : vector<8x8xf32> to vector<1x8x8xf32>
    %73 = vector.broadcast %72 : vector<1x8x8xf32> to vector<4x8x8xf32>
    %74 = arith.addf %70, %73 : vector<4x8x8xf32>
    %cst_25 = arith.constant dense<0xFF800000> : vector<4x8xf32>
    %75 = vector.multi_reduction <maximumf>, %74, %cst_25 [2] : vector<4x8x8xf32> to vector<4x8xf32>
    %76 = vector.shape_cast %75 : vector<4x8xf32> to vector<4x8x1xf32>
    %77 = vector.broadcast %76 : vector<4x8x1xf32> to vector<4x8x8xf32>
    %78 = arith.subf %74, %77 : vector<4x8x8xf32>
    %79 = math.exp %78 : vector<4x8x8xf32>
    %cst_26 = arith.constant dense<0.000000e+00> : vector<4x8xf32>
    %80 = vector.multi_reduction <add>, %79, %cst_26 [2] : vector<4x8x8xf32> to vector<4x8xf32>
    %81 = vector.shape_cast %80 : vector<4x8xf32> to vector<4x8x1xf32>
    %82 = tpu.reciprocal %81 {approx = true} : vector<4x8x1xf32> -> vector<4x8x1xf32>
    %83 = vector.broadcast %82 : vector<4x8x1xf32> to vector<4x8x8xf32>
    %84 = arith.mulf %79, %83 : vector<4x8x8xf32>
    "tpu.trace_start"() <{level = 10 : i32, message = "hqk,hkd->hqd"}> : () -> ()
    %cst_27 = arith.constant dense<0.000000e+00> : vector<4x8x8xf32>
    %85 = tpu.matmul %84, %67, %cst_27 {dimension_numbers = #tpu.dot_dimension_numbers<[2], [1], [1], [2], [0, 0, 0, 1, 1, 2], [0], [0]>} : vector<4x8x8xf32>, vector<4x8x8xf32>, vector<4x8x8xf32> -> vector<4x8x8xf32>
    "tpu.trace_stop"() : () -> ()
    %86 = vector.extract_strided_slice %85 {offsets = [0, 0, 0], sizes = [1, 8, 8], strides = [1, 1, 1]} : vector<4x8x8xf32> to vector<1x8x8xf32>
    %87 = vector.shape_cast %86 : vector<1x8x8xf32> to vector<8x8xf32>
    %88 = vector.extract_strided_slice %85 {offsets = [1, 0, 0], sizes = [1, 8, 8], strides = [1, 1, 1]} : vector<4x8x8xf32> to vector<1x8x8xf32>
    %89 = vector.shape_cast %88 : vector<1x8x8xf32> to vector<8x8xf32>
    %90 = vector.extract_strided_slice %85 {offsets = [2, 0, 0], sizes = [1, 8, 8], strides = [1, 1, 1]} : vector<4x8x8xf32> to vector<1x8x8xf32>
    %91 = vector.shape_cast %90 : vector<1x8x8xf32> to vector<8x8xf32>
    %92 = vector.extract_strided_slice %85 {offsets = [3, 0, 0], sizes = [1, 8, 8], strides = [1, 1, 1]} : vector<4x8x8xf32> to vector<1x8x8xf32>
    %93 = vector.shape_cast %92 : vector<1x8x8xf32> to vector<8x8xf32>
    %94 = tpu.concatenate %87, %89, %91, %93 in 1 : vector<8x8xf32>, vector<8x8xf32>, vector<8x8xf32>, vector<8x8xf32> -> vector<8x32xf32>
    %95 = arith.truncf %94 : vector<8x32xf32> to vector<8x32xbf16>
    %c0_28 = arith.constant 0 : index
    %c0_29 = arith.constant 0 : index
    %c0_30 = arith.constant 0 : index
    %96 = vector.load %arg10[%c0_28, %c0_29, %c0_30] : memref<1x32x128xbf16, #tpu.memory_space<vmem>>, vector<1x32x128xbf16>
    %97 = vector.shape_cast %96 : vector<1x32x128xbf16> to vector<32x128xbf16>
    %cst_31 = arith.constant dense<0.000000e+00> : vector<8x128xf32>
    %98 = tpu.matmul %95, %97, %cst_31 {dimension_numbers = #tpu.dot_dimension_numbers<[1], [0], [0], [1], [0, 0, 1, 1], [], []>} : vector<8x32xbf16>, vector<32x128xbf16>, vector<8x128xf32> -> vector<8x128xf32>
    %99 = arith.addf %4, %98 : vector<8x128xf32>
    %c0_32 = arith.constant 0 : index
    %c0_33 = arith.constant 0 : index
    %c0_34 = arith.constant 0 : index
    %100 = vector.load %arg11[%c0_32, %c0_33, %c0_34] : memref<1x1x128xf32, #tpu.memory_space<vmem>>, vector<1x1x128xf32>
    %101 = vector.shape_cast %100 : vector<1x1x128xf32> to vector<1x128xf32>
    %102 = vector.broadcast %101 : vector<1x128xf32> to vector<8x128xf32>
    %103 = arith.addf %99, %102 : vector<8x128xf32>
    %c0_35 = arith.constant 0 : index
    %c0_36 = arith.constant 0 : index
    %c0_37 = arith.constant 0 : index
    %104 = vector.load %arg12[%c0_35, %c0_36, %c0_37] : memref<1x1x128xf32, #tpu.memory_space<vmem>>, vector<1x1x128xf32>
    %105 = vector.shape_cast %104 : vector<1x1x128xf32> to vector<1x128xf32>
    %c0_38 = arith.constant 0 : index
    %c0_39 = arith.constant 0 : index
    %c0_40 = arith.constant 0 : index
    %106 = vector.load %arg13[%c0_38, %c0_39, %c0_40] : memref<1x1x128xf32, #tpu.memory_space<vmem>>, vector<1x1x128xf32>
    %107 = vector.shape_cast %106 : vector<1x1x128xf32> to vector<1x128xf32>
    %108 = vector.broadcast %0 : vector<1x128xf32> to vector<8x128xf32>
    %109 = arith.mulf %103, %108 : vector<8x128xf32>
    %cst_41 = arith.constant dense<0.000000e+00> : vector<8xf32>
    %110 = vector.multi_reduction <add>, %109, %cst_41 [1] : vector<8x128xf32> to vector<8xf32>
    %111 = vector.shape_cast %110 : vector<8xf32> to vector<8x1xf32>
    %cst_42 = arith.constant 3.125000e-02 : f32
    %112 = vector.broadcast %cst_42 : f32 to vector<8x1xf32>
    %113 = arith.mulf %111, %112 : vector<8x1xf32>
    %114 = vector.broadcast %113 : vector<8x1xf32> to vector<8x128xf32>
    %115 = arith.subf %103, %114 : vector<8x128xf32>
    %116 = vector.broadcast %0 : vector<1x128xf32> to vector<8x128xf32>
    %117 = arith.mulf %115, %116 : vector<8x128xf32>
    %118 = arith.mulf %117, %117 : vector<8x128xf32>
    %cst_43 = arith.constant dense<0.000000e+00> : vector<8xf32>
    %119 = vector.multi_reduction <add>, %118, %cst_43 [1] : vector<8x128xf32> to vector<8xf32>
    %120 = vector.shape_cast %119 : vector<8xf32> to vector<8x1xf32>
    %cst_44 = arith.constant 3.125000e-02 : f32
    %121 = vector.broadcast %cst_44 : f32 to vector<8x1xf32>
    %122 = arith.mulf %120, %121 : vector<8x1xf32>
    %cst_45 = arith.constant 9.99999974E-6 : f32
    %123 = vector.broadcast %cst_45 : f32 to vector<8x1xf32>
    %124 = arith.addf %122, %123 : vector<8x1xf32>
    %125 = math.rsqrt %124 : vector<8x1xf32>
    %126 = vector.broadcast %125 : vector<8x1xf32> to vector<8x128xf32>
    %127 = arith.mulf %117, %126 : vector<8x128xf32>
    %128 = vector.broadcast %105 : vector<1x128xf32> to vector<8x128xf32>
    %129 = arith.mulf %127, %128 : vector<8x128xf32>
    %130 = vector.broadcast %107 : vector<1x128xf32> to vector<8x128xf32>
    %131 = arith.addf %129, %130 : vector<8x128xf32>
    %132 = arith.truncf %131 : vector<8x128xf32> to vector<8x128xbf16>
    %c0_46 = arith.constant 0 : index
    %c0_47 = arith.constant 0 : index
    %c0_48 = arith.constant 0 : index
    %133 = vector.load %arg14[%c0_46, %c0_47, %c0_48] : memref<1x128x128xbf16, #tpu.memory_space<vmem>>, vector<1x128x128xbf16>
    %134 = vector.shape_cast %133 : vector<1x128x128xbf16> to vector<128x128xbf16>
    %cst_49 = arith.constant dense<0.000000e+00> : vector<8x128xf32>
    %135 = tpu.matmul %132, %134, %cst_49 {dimension_numbers = #tpu.dot_dimension_numbers<[1], [0], [0], [1], [0, 0, 1, 1], [], []>} : vector<8x128xbf16>, vector<128x128xbf16>, vector<8x128xf32> -> vector<8x128xf32>
    %c0_50 = arith.constant 0 : index
    %c0_51 = arith.constant 0 : index
    %c0_52 = arith.constant 0 : index
    %136 = vector.load %arg15[%c0_50, %c0_51, %c0_52] : memref<1x1x128xf32, #tpu.memory_space<vmem>>, vector<1x1x128xf32>
    %137 = vector.shape_cast %136 : vector<1x1x128xf32> to vector<1x128xf32>
    %138 = vector.broadcast %137 : vector<1x128xf32> to vector<8x128xf32>
    %139 = arith.addf %135, %138 : vector<8x128xf32>
    %cst_53 = arith.constant 0.000000e+00 : f32
    %140 = vector.broadcast %cst_53 : f32 to vector<8x128xf32>
    %141 = arith.maximumf %139, %140 : vector<8x128xf32>
    %142 = arith.truncf %141 : vector<8x128xf32> to vector<8x128xbf16>
    %c0_54 = arith.constant 0 : index
    %c0_55 = arith.constant 0 : index
    %c0_56 = arith.constant 0 : index
    %143 = vector.load %arg16[%c0_54, %c0_55, %c0_56] : memref<1x128x128xbf16, #tpu.memory_space<vmem>>, vector<1x128x128xbf16>
    %144 = vector.shape_cast %143 : vector<1x128x128xbf16> to vector<128x128xbf16>
    %cst_57 = arith.constant dense<0.000000e+00> : vector<8x128xf32>
    %145 = tpu.matmul %142, %144, %cst_57 {dimension_numbers = #tpu.dot_dimension_numbers<[1], [0], [0], [1], [0, 0, 1, 1], [], []>} : vector<8x128xbf16>, vector<128x128xbf16>, vector<8x128xf32> -> vector<8x128xf32>
    %146 = arith.addf %103, %145 : vector<8x128xf32>
    %c0_58 = arith.constant 0 : index
    %c0_59 = arith.constant 0 : index
    %c0_60 = arith.constant 0 : index
    %147 = vector.load %arg17[%c0_58, %c0_59, %c0_60] : memref<1x1x128xf32, #tpu.memory_space<vmem>>, vector<1x1x128xf32>
    %148 = vector.shape_cast %147 : vector<1x1x128xf32> to vector<1x128xf32>
    %149 = vector.broadcast %148 : vector<1x128xf32> to vector<8x128xf32>
    %150 = arith.addf %146, %149 : vector<8x128xf32>
    %c0_61 = arith.constant 0 : index
    %c0_62 = arith.constant 0 : index
    %151 = vector.load %arg19[%c0_61, %c0_62] : memref<8x128xf32, #tpu.memory_space<vmem>>, vector<8x128xf32>
    tpu.vector_store %arg19[%c0_61, %c0_62], %150 {strides = array<i32>} : memref<8x128xf32, #tpu.memory_space<vmem>>, vector<8x128xf32>,
    %c1_i32 = arith.constant 1 : i32
    %152 = arith.cmpi eq, %arg0, %c1_i32 : i32
    %153 = arith.extui %152 : i1 to i32
    %c0_i32_63 = arith.constant 0 : i32
    %154 = arith.cmpi ne, %153, %c0_i32_63 : i32
    scf.if %154 {
      %c0_64 = arith.constant 0 : index
      %c0_65 = arith.constant 0 : index
      %155 = vector.load %arg4[%c0_64, %c0_65] : memref<1x128xf32, #tpu.memory_space<vmem>>, vector<1x128xf32>
      %c0_66 = arith.constant 0 : index
      %c0_67 = arith.constant 0 : index
      %156 = vector.load %arg5[%c0_66, %c0_67] : memref<1x128xf32, #tpu.memory_space<vmem>>, vector<1x128xf32>
      %157 = vector.broadcast %0 : vector<1x128xf32> to vector<8x128xf32>
      %158 = arith.mulf %150, %157 : vector<8x128xf32>
      %cst_68 = arith.constant dense<0.000000e+00> : vector<8xf32>
      %159 = vector.multi_reduction <add>, %158, %cst_68 [1] : vector<8x128xf32> to vector<8xf32>
      %160 = vector.shape_cast %159 : vector<8xf32> to vector<8x1xf32>
      %cst_69 = arith.constant 3.125000e-02 : f32
      %161 = vector.broadcast %cst_69 : f32 to vector<8x1xf32>
      %162 = arith.mulf %160, %161 : vector<8x1xf32>
      %163 = vector.broadcast %162 : vector<8x1xf32> to vector<8x128xf32>
      %164 = arith.subf %150, %163 : vector<8x128xf32>
      %165 = vector.broadcast %0 : vector<1x128xf32> to vector<8x128xf32>
      %166 = arith.mulf %164, %165 : vector<8x128xf32>
      %167 = arith.mulf %166, %166 : vector<8x128xf32>
      %cst_70 = arith.constant dense<0.000000e+00> : vector<8xf32>
      %168 = vector.multi_reduction <add>, %167, %cst_70 [1] : vector<8x128xf32> to vector<8xf32>
      %169 = vector.shape_cast %168 : vector<8xf32> to vector<8x1xf32>
      %cst_71 = arith.constant 3.125000e-02 : f32
      %170 = vector.broadcast %cst_71 : f32 to vector<8x1xf32>
      %171 = arith.mulf %169, %170 : vector<8x1xf32>
      %cst_72 = arith.constant 9.99999974E-6 : f32
      %172 = vector.broadcast %cst_72 : f32 to vector<8x1xf32>
      %173 = arith.addf %171, %172 : vector<8x1xf32>
      %174 = math.rsqrt %173 : vector<8x1xf32>
      %175 = vector.broadcast %174 : vector<8x1xf32> to vector<8x128xf32>
      %176 = arith.mulf %166, %175 : vector<8x128xf32>
      %177 = vector.broadcast %155 : vector<1x128xf32> to vector<8x128xf32>
      %178 = arith.mulf %176, %177 : vector<8x128xf32>
      %179 = vector.broadcast %156 : vector<1x128xf32> to vector<8x128xf32>
      %180 = arith.addf %178, %179 : vector<8x128xf32>
      %c0_73 = arith.constant 0 : index
      %c0_74 = arith.constant 0 : index
      %181 = vector.load %arg18[%c0_73, %c0_74] : memref<8x128xf32, #tpu.memory_space<vmem>>, vector<8x128xf32>
      tpu.vector_store %arg18[%c0_73, %c0_74], %180 {strides = array<i32>} : memref<8x128xf32, #tpu.memory_space<vmem>>, vector<8x128xf32>,
    } else {
    }
    return
  }
  func.func @transform_0(%arg0: i32) -> (i32, i32) {
    %c0_i32 = arith.constant 0 : i32
    %c0_i32_0 = arith.constant 0 : i32
    %c0_i32_1 = arith.constant 0 : i32
    return %c0_i32, %c0_i32_0 : i32, i32
  }
  func.func @transform_1(%arg0: i32) -> (i32, i32) {
    %c0_i32 = arith.constant 0 : i32
    %c0_i32_0 = arith.constant 0 : i32
    %c0_i32_1 = arith.constant 0 : i32
    return %c0_i32, %c0_i32_0 : i32, i32
  }
  func.func @transform_2(%arg0: i32) -> (i32, i32) {
    %c0_i32 = arith.constant 0 : i32
    %c0_i32_0 = arith.constant 0 : i32
    %c0_i32_1 = arith.constant 0 : i32
    return %c0_i32, %c0_i32_0 : i32, i32
  }
  func.func @transform_3(%arg0: i32) -> (i32, i32) {
    %c0_i32 = arith.constant 0 : i32
    %c0_i32_0 = arith.constant 0 : i32
    %c0_i32_1 = arith.constant 0 : i32
    return %c0_i32, %c0_i32_0 : i32, i32
  }
  func.func @transform_4(%arg0: i32) -> (i32, i32) {
    %c0_i32 = arith.constant 0 : i32
    %c0_i32_0 = arith.constant 0 : i32
    %c0_i32_1 = arith.constant 0 : i32
    return %c0_i32, %c0_i32_0 : i32, i32
  }
  func.func @transform_5(%arg0: i32) -> (i32, i32, i32) {
    %c0_i32 = arith.constant 0 : i32
    %c0_i32_0 = arith.constant 0 : i32
    %c0_i32_1 = arith.constant 0 : i32
    return %arg0, %c0_i32, %c0_i32_0 : i32, i32, i32
  }
  func.func @transform_6(%arg0: i32) -> (i32, i32, i32) {
    %c0_i32 = arith.constant 0 : i32
    %c0_i32_0 = arith.constant 0 : i32
    %c0_i32_1 = arith.constant 0 : i32
    return %arg0, %c0_i32, %c0_i32_0 : i32, i32, i32
  }
  func.func @transform_7(%arg0: i32) -> (i32, i32, i32) {
    %c0_i32 = arith.constant 0 : i32
    %c0_i32_0 = arith.constant 0 : i32
    %c0_i32_1 = arith.constant 0 : i32
    return %arg0, %c0_i32, %c0_i32_0 : i32, i32, i32
  }
  func.func @transform_8(%arg0: i32) -> (i32, i32, i32) {
    %c0_i32 = arith.constant 0 : i32
    %c0_i32_0 = arith.constant 0 : i32
    %c0_i32_1 = arith.constant 0 : i32
    return %arg0, %c0_i32, %c0_i32_0 : i32, i32, i32
  }
  func.func @transform_9(%arg0: i32) -> (i32, i32, i32) {
    %c0_i32 = arith.constant 0 : i32
    %c0_i32_0 = arith.constant 0 : i32
    %c0_i32_1 = arith.constant 0 : i32
    return %arg0, %c0_i32, %c0_i32_0 : i32, i32, i32
  }
  func.func @transform_10(%arg0: i32) -> (i32, i32, i32) {
    %c0_i32 = arith.constant 0 : i32
    %c0_i32_0 = arith.constant 0 : i32
    %c0_i32_1 = arith.constant 0 : i32
    return %arg0, %c0_i32, %c0_i32_0 : i32, i32, i32
  }
  func.func @transform_11(%arg0: i32) -> (i32, i32, i32) {
    %c0_i32 = arith.constant 0 : i32
    %c0_i32_0 = arith.constant 0 : i32
    %c0_i32_1 = arith.constant 0 : i32
    return %arg0, %c0_i32, %c0_i32_0 : i32, i32, i32
  }
  func.func @transform_12(%arg0: i32) -> (i32, i32, i32) {
    %c0_i32 = arith.constant 0 : i32
    %c0_i32_0 = arith.constant 0 : i32
    %c0_i32_1 = arith.constant 0 : i32
    return %arg0, %c0_i32, %c0_i32_0 : i32, i32, i32
  }
  func.func @transform_13(%arg0: i32) -> (i32, i32, i32) {
    %c0_i32 = arith.constant 0 : i32
    %c0_i32_0 = arith.constant 0 : i32
    %c0_i32_1 = arith.constant 0 : i32
    return %arg0, %c0_i32, %c0_i32_0 : i32, i32, i32
  }
  func.func @transform_14(%arg0: i32) -> (i32, i32, i32) {
    %c0_i32 = arith.constant 0 : i32
    %c0_i32_0 = arith.constant 0 : i32
    %c0_i32_1 = arith.constant 0 : i32
    return %arg0, %c0_i32, %c0_i32_0 : i32, i32, i32
  }
  func.func @transform_15(%arg0: i32) -> (i32, i32, i32) {
    %c0_i32 = arith.constant 0 : i32
    %c0_i32_0 = arith.constant 0 : i32
    %c0_i32_1 = arith.constant 0 : i32
    return %arg0, %c0_i32, %c0_i32_0 : i32, i32, i32
  }
  func.func @transform_16(%arg0: i32) -> (i32, i32, i32) {
    %c0_i32 = arith.constant 0 : i32
    %c0_i32_0 = arith.constant 0 : i32
    %c0_i32_1 = arith.constant 0 : i32
    return %arg0, %c0_i32, %c0_i32_0 : i32, i32, i32
  }
  func.func @transform_17(%arg0: i32) -> (i32, i32) {
    %c0_i32 = arith.constant 0 : i32
    %c0_i32_0 = arith.constant 0 : i32
    %c0_i32_1 = arith.constant 0 : i32
    return %c0_i32, %c0_i32_0 : i32, i32
  }
}

</mosaic_0001>

<bundles_post_ra>
// kernel: opt_model_forward.1
= control target key start
LH: loop header
LB: loop body
LE: loop exit
PB: predicated region body
PF: predicated region fallthrough
CT: control target
= control target key end

     0   :  { %s2121_s0 = inlined_call_operand.vmem [shape: f32[8,128], index: 0, kind: input, shape index: {}]   ;;  %s2122_s1 = inlined_call_operand.vmem [shape: f32[8,8], index: 1, kind: input, shape index: {}]   ;;  %s2123_s2 = inlined_call_operand.vmem [shape: f32[1,128], index: 2, kind: input, shape index: {}]   ;;  %s2124_s3 = inlined_call_operand.vmem [shape: f32[1,128], index: 3, kind: input, shape index: {}]   ;;  %s2125_s4 = inlined_call_operand.vmem [shape: f32[1,128], index: 4, kind: input, shape index: {}]   ;;  %s2126_s5 = inlined_call_operand.vmem [shape: f32[2,1,128], index: 5, kind: input, shape index: {}]   ;;  %s2127_s6 = inlined_call_operand.vmem [shape: f32[2,1,128], index: 6, kind: input, shape index: {}]   ;;  %s2128_s7 = inlined_call_operand.vmem [shape: bf16[2,128,96], index: 7, kind: input, shape index: {}]   ;;  %s2129_s8 = inlined_call_operand.vmem [shape: f32[2,1,96], index: 8, kind: input, shape index: {}]   ;;  %s2130_s9 = inlined_call_operand.vmem [shape: bf16[2,32,128], index: 9, kind: input, shape index: {}]   ;;  %s2131_s10 = inlined_call_operand.vmem [shape: f32[2,1,128], index: 10, kind: input, shape index: {}]   ;;  %s2132_s11 = inlined_call_operand.vmem [shape: f32[2,1,128], index: 11, kind: input, shape index: {}]   ;;  %s2133_s12 = inlined_call_operand.vmem [shape: f32[2,1,128], index: 12, kind: input, shape index: {}]   ;;  %s2134_s13 = inlined_call_operand.vmem [shape: bf16[2,128,128], index: 13, kind: input, shape index: {}]   ;;  %s2135_s14 = inlined_call_operand.vmem [shape: f32[2,1,128], index: 14, kind: input, shape index: {}]   ;;  %s2136_s15 = inlined_call_operand.vmem [shape: bf16[2,128,128], index: 15, kind: input, shape index: {}]   ;;  %s2137_s16 = inlined_call_operand.vmem [shape: f32[2,1,128], index: 16, kind: input, shape index: {}]   ;;  %s2138_s17 = inlined_call_operand.hbm [shape: f32[8,128], index: 17, kind: output, shape index: {}]  }
   0x1   :  { %2140 = sst [smem:[#allocation7_spill]] %s2121_s0 }
   0x2   :  { %2141 = sst [smem:[#allocation8_spill]] %s2122_s1 }
   0x3   :  { %2142 = sst [smem:[#allocation9_spill]] %s2123_s2 }
   0x4   :  { %2143 = sst [smem:[#allocation10_spill]] %s2124_s3 }
   0x5   :  { %2144 = sst [smem:[#allocation11_spill]] %s2125_s4 }
   0x6   :  { %2145 = sst [smem:[#allocation12_spill]] %s2128_s7 }
   0x7   :  { %2146 = sst [smem:[#allocation13_spill]] %s2130_s9 }
   0x8   :  { %2147 = sst [smem:[#allocation14_spill]] %s2138_s17 }
   0x9   :  { %22 = vsyncpa [#allocation4], 0  ;;  %s1916_s24 = smov 0  }
   0xa LB: > { %2148 = sst [smem:[#allocation6_spill]] %s1815_s24  ;;  %s1922_s25 = sadd.s32 4294967295, %s1815_s24   ;;  %s1815_s24 = sphi %s1916_s24, %s28_s24  }
   0xb   : > { %p1555_p0 = scmp.ge.s32.totalorder %s1815_s24, 1  ;;  %p577_p1 = scmp.lt.s32.totalorder %s1815_s24, 3 }
   0xd   : > { %p578_p2 = pnand %p1555_p0, %p577_p1 }
   0xe   : > { %p663_p3 = scmp.lt.s32.totalorder (!%p578_p2), %s1922_s25, 1  ;;  %s2149_s2 = sld [smem:[#allocation9_spill]] (!%p578_p2) }
   0xf   : > { %581 = sbr.rel (%p578_p2) target bundleno = 2285 (0x8ed), region = 88  ;;  %s2150_s7 = sld [smem:[#allocation12_spill]] (!%p578_p2) }
  0x10   : > { %s2151_s9 = sld [smem:[#allocation13_spill]] (!%p578_p2)  ;;  %p1564_p4 = scmp.ne.s32.totalorder (!%p578_p2), %s1922_s25, 0 }
  0x14   : > { %v708_v0 = vld [vmem:[%s2149_s2] sm:$0x1]  ;;  %s1931_s28 = scalar_select %p663_p3, %s1922_s25, 1 }
  0x15   : > { %s2152_s22 = sld [smem:[#allocation7_spill]] (!%p1564_p4) }
  0x16   : > { %s1687_s20 = sshll.u32 %s1931_s28, 6  ;;  %s1688_s0 = sshll.u32 %s1931_s28, 4 }
  0x17   : > { %s1949_s29 = scalar_lea.vmem %s2150_s7, %s1687_s20  ;;  %s1955_s17 = scalar_lea.vmem %s2151_s9, %s1688_s0 }
  0x18   : > { %s684_s18 = scalar_lea.vmem %s2131_s10, %s1931_s28  ;;  %s690_s26 = scalar_lea.vmem %s2133_s12, %s1931_s28 }
  0x19   : > { %s1972_s3 = scalar_lea.vmem %s2134_s13, %s1687_s20  ;;  %s698_s0 = scalar_lea.vmem %s2135_s14, %s1931_s28 }
  0x1a   : > { %s1981_s30 = scalar_lea.vmem %s2136_s15, %s1687_s20  ;;  %s706_s21 = scalar_lea.vmem %s2137_s16, %s1931_s28 }
  0x1b   : > { %712 = sbr.rel (%p1564_p4) target bundleno = 34 (0x22), region = 92 }
  0x20   : > { %v713_v1 = vld [vmem:[%s2152_s22] sm:$0xff] }
  0x21   : > { %714 = vst [vmem:[#allocation2] sm:$0xff] %v713_v1 }
  0x22 PF: > { %v1993_v3 = vperm.slane %v708_v0, 0  ;;  %v1698_v5 = vld [vmem:[%s1949_s29 + $0x38] sm:$0xff]  ;;  %v1697_v11 = vld [vmem:[%s1949_s29 + $0x30] sm:$0xff]  ;;  %v1696_v12 = vld [vmem:[%s1949_s29 + $0x28] sm:$0xff]  ;;  %s2154_s24 = scalar_lea.vmem %s2127_s6, %s1931_s28  ;;  %s2155_s19 = scalar_lea.vmem %s2129_s8, %s1931_s28  ;;  %vm842_vm3 = vcmask 64512   ;;  %vm1115_vm4 = vcmask 130048  }
  0x23   : > { %820 = vmatpush.bf16.msra.mxu0 %v1698_v5  ;;  %v1695_v13 = vld [vmem:[%s1949_s29 + $0x20] sm:$0xff]  ;;  %v1694_v14 = vld [vmem:[%s1949_s29 + $0x18] sm:$0xff]  ;;  %v1693_v15 = vld [vmem:[%s1949_s29 + $0x10] sm:$0xff]  ;;  %s1817_s23 = smov 104   ;;  %s1818_s7 = smov 120   ;;  %vm1117_vm5 = vcmask 195584  }
  0x24   : > { %v1692_v16 = vld [vmem:[%s1949_s29 + $0x8] sm:$0xff]  ;;  %v1691_v17 = vld [vmem:[%s1949_s29] sm:$0xff]  ;;  %s2153_s29 = scalar_lea.vmem %s2126_s5, %s1931_s28  ;;  %s1819_s22 = smov 96   ;;  %vm1136_vm6 = vcmask 261120  }
  0x25   : > { %v1745_v27 = vld [vmem:[%s2153_s29] ss:$0 sm:$0xff]  ;;  %s1820_s9 = smov 112   ;;  %s2156_s27 = sld [smem:[#allocation8_spill]] }
  0x26   : > { %v1746_v30 = vld [vmem:[%s2154_s24] ss:$0 sm:$0xff]  ;;  %s1821_s2 = smov 64   ;;  %s1822_s24 = smov 24  }
  0x27   : > { %821 = vmatpush.bf16.msra.mxu0 %v1697_v11  ;;  %v1747_v34 = vld [vmem:[%s2155_s19] ss:$0 sm:$0xff]  ;;  %s1823_s4 = smov 8   ;;  %s1824_s1 = smov 16  }
  0x28   : > { %v1991_v2 = vld [vmem:[#allocation2] sm:$0xff]  ;;  %p1682_p5 = scmp.ne.s32.totalorder %s1922_s25, 1 }
  0x29   : > { %v721_v4 = vmul.f32 %v1993_v3, %v1991_v2 }
  0x2b   : > { %722 = vadd.xlane.f32.xlu0 %v721_v4  ;;  %822 = vmatpush.bf16.msra.mxu0 %v1696_v12  ;;  %v949_v45 = vld [vmem:[%s2156_s27] sm:$0xff] }
  0x2f   : > { %823 = vmatpush.bf16.msra.mxu0 %v1695_v13 }
  0x33   : > { %824 = vmatpush.bf16.msra.mxu0 %v1694_v14 }
  0x37   : > { %825 = vmatpush.bf16.msra.mxu0 %v1693_v15 }
  0x3b   : > { %826 = vmatpush.bf16.msra.mxu0 %v1692_v16 }
  0x3f   : > { %827 = vmatpush.bf16.msra.mxu0 %v1691_v17 }
  0x9e   : > { %v723_v6 = vpop.xlane.xlu0 %722 }
  0x9f   : > { %v724_v7 = vmul.f32 0.03125, %v723_v6 }
  0xa1   : > { %v725_v8 = vsub.f32 %v1991_v2, %v724_v7 }
  0xa3   : > { %v726_v9 = vmul.f32 %v725_v8, %v1993_v3 }
  0xa5   : > { %v727_v10 = vmul.f32 %v726_v9, %v726_v9 }
  0xa7   : > { %728 = vadd.xlane.f32.xlu0 %v727_v10 }
 0x11a   : > { %v729_v18 = vpop.xlane.xlu0 %728 }
 0x11b   : > { %v730_v19 = vmul.f32 0.03125, %v729_v18 }
 0x11d   : > { %v731_v20 = vadd.f32 1e-05, %v730_v19 }
 0x11f   : > { %1753 = vrsqrt.f32 %v731_v20  ;;  %vm738_vm1 = vweird.f32 %v731_v20 }
 0x125   : > { %v1754_v21 = vpop.eup %1753 }
 0x126   : > { %v733_v22 = vmul.f32 %v1754_v21, %v731_v20  ;;  %vm739_vm0 = vweird.f32 %v1754_v21 }
 0x127   : > { %vm740_vm2 = vmor %vm738_vm1, %vm739_vm0 }
 0x128   : > { %v734_v23 = vmul.f32 %v1754_v21, %v733_v22 }
 0x12a   : > { %v735_v24 = vmul.f32 0.5, %v734_v23 }
 0x12c   : > { %v736_v25 = vsub.f32 1.5, %v735_v24 }
 0x12e   : > { %v737_v26 = vmul.f32 %v1754_v21, %v736_v25 }
 0x130   : > { %v741_v28 = vsel %vm740_vm2, %v1754_v21, %v737_v26 }
 0x131   : > { %v742_v29 = vmul.f32 %v741_v28, %v726_v9 }
 0x133   : > { %v746_v31 = vmul.f32 %v1745_v27, %v742_v29 }
 0x135   : > { %v750_v32 = vadd.f32 %v1746_v30, %v746_v31 }
 0x137   : > { %v751_v33 = vpack.c.bf16 %v750_v32, %v750_v32 }
 0x139   : > { %828 = vmatmul.bf16.vlgmr.msra.gmra.mxu0 %v751_v33 }
 0x1b6   : > { %v829_v35 = vpop.f32.mrf.mxu0 }
 0x1b7   : > { %v830_v36 = vadd.f32 %v1747_v34, %v829_v35 }
 0x1b9   : > { %838 = vrot.lane.b32.xlu2 %v830_v36, %s1817_s23  ;;  %834 = vrot.lane.b32.xlu1 %v830_v36, %s1818_s7 }
 0x1be   : > { %v831_v37 = vpop.f32.mrf.mxu0 }
 0x1c1   : > { %840 = vrot.lane.b32.xlu2 %v830_v36, %s1819_s22  ;;  %836 = vrot.lane.b32.xlu1 %v830_v36, %s1820_s9 }
 0x213   : > { %v839_v38 = vpop.permute.xlu2 %838 }
 0x214   : > { %919 = vrot.lane.b32.xlu2 %v839_v38, %s1819_s22 }
 0x21b   : > { %v841_v39 = vpop.permute.xlu2 %840 }
 0x21c   : > { %1597 = vmatpush.xpose.msk.msra.mxu3 %vm842_vm3, %v841_v39 }
 0x21f   : > { %1598 = vmatmul.msk.f32.vlgmr.msra.gmra.mxu3 %vm842_vm3, %v830_v36 }
 0x22b   : > { %v835_v40 = vpop.permute.xlu1 %834 }
 0x22c   : > { %867 = vrot.lane.b32.xlu0 %v835_v40, %s1819_s22  ;;  %v1740_v54 = vpack.i.bf16 %v835_v40, %v830_v36 }
 0x233   : > { %v2024_v41 = vpop.permute.xlu1 %836 }
 0x234   : > { %893 = vrot.lane.b32.xlu1 %v2024_v41, %s1819_s22 }
 0x26e   : > { %v920_v42 = vpop.permute.xlu2 %919 }
 0x26f   : > { %1603 = vmatpush.xpose.msk.msrb.mxu0 %vm842_vm3, %v920_v42  ;;  %v1700_v42 = vld [vmem:[%s1955_s17 + $0x8] sm:$0xff] }
 0x272   : > { %1604 = vmatmul.msk.f32.vlgmr.msrb.gmra.mxu0 %vm842_vm3, %v839_v38 }
 0x29e   : > { %v868_v43 = vpop.permute.xlu0 %867 }
 0x29f   : > { %1599 = vmatpush.xpose.msk.msrb.mxu3 %vm842_vm3, %v868_v43  ;;  %v1699_v43 = vld [vmem:[%s1955_s17] sm:$0xff] }
 0x2a2   : > { %v864_v44 = vpop.f32.mrf.mxu3  ;;  %1600 = vmatmul.msk.f32.vlgmr.msrb.gmra.mxu3 %vm842_vm3, %v835_v40 }
 0x2a3   : > { %v945_v46 = vmul.f32 0.35355338, %v864_v44 }
 0x2a5   : > { %v950_v47 = vadd.f32 %v949_v45, %v945_v46 }
 0x2a6   : > { %v894_v48 = vpop.permute.xlu1 %893 }
 0x2a7   : > { %1601 = vmatpush.xpose.msk.msra.mxu3 %vm842_vm3, %v894_v48  ;;  %v954_v49 = vsel %vm842_vm3, %v950_v47, -inf }
 0x2a8   : > { %955 = vmax.xlane.f32.xlu1 %v954_v49 }
 0x2aa   : > { %1602 = vmatmul.msk.f32.vlgmr.msra.gmra.mxu3 %vm842_vm3, %v2024_v41 }
 0x2ef   : > { %v942_v50 = vpop.f32.mrf.mxu0 }
 0x2f0   : > { %v948_v51 = vmul.f32 0.35355338, %v942_v50 }
 0x2f2   : > { %v953_v52 = vadd.f32 %v949_v45, %v948_v51  ;;  %v1748_v51 = vld [vmem:[%s684_s18] ss:$0 sm:$0xff]  ;;  %s2157_s18 = scalar_lea.vmem %s2132_s11, %s1931_s28 }
 0x2f4   : > { %v963_v53 = vsel %vm842_vm3, %v953_v52, -inf }
 0x2f5   : > { %964 = vmax.xlane.f32.xlu0 %v963_v53 }
 0x309   : > { %1741 = vrot.lane.b32.xlu0 %v1740_v54, %s1821_s2 }
 0x31b   : > { %v956_v55 = vpop.xlane.xlu1 %955 }
 0x31c   : > { %v966_v56 = vsub.f32 %v950_v47, %v956_v55 }
 0x31e   : > { %v970_v57 = vmul.f32 1.442695, %v966_v56 }
 0x320   : > { %1755 = vpow2.f32 %v970_v57  ;;  %v1708_v57 = vld [vmem:[%s1972_s3 + $0x38] sm:$0xff] }
 0x325   : > { %v890_v58 = vpop.f32.mrf.mxu3 }
 0x326   : > { %v1756_v59 = vpop.eup %1755  ;;  %v946_v60 = vmul.f32 0.35355338, %v890_v58 }
 0x327   : > { %v978_v61 = vsel %vm842_vm3, %v1756_v59, 0.0 }
 0x328   : > { %979 = vadd.xlane.f32.xlu1 %v978_v61  ;;  %v951_v62 = vadd.f32 %v949_v45, %v946_v60 }
 0x32a   : > { %v957_v63 = vsel %vm842_vm3, %v951_v62, -inf }
 0x32b   : > { %958 = vmax.xlane.f32.xlu2 %v957_v63  ;;  %v1706_v63 = vld [vmem:[%s1972_s3 + $0x28] sm:$0xff] }
 0x32d   : > { %v916_v0 = vpop.f32.mrf.mxu3 }
 0x32e   : > { %v947_v1 = vmul.f32 0.35355338, %v916_v0  ;;  %v1705_v0 = vld [vmem:[%s1972_s3 + $0x20] sm:$0xff] }
 0x330   : > { %v952_v4 = vadd.f32 %v949_v45, %v947_v1  ;;  %v1704_v1 = vld [vmem:[%s1972_s3 + $0x18] sm:$0xff] }
 0x332   : > { %v960_v5 = vsel %vm842_vm3, %v952_v4, -inf }
 0x333   : > { %961 = vmax.xlane.f32.xlu2 %v960_v5  ;;  %v1702_v5 = vld [vmem:[%s1972_s3 + $0x8] sm:$0xff] }
 0x368   : > { %v965_v6 = vpop.xlane.xlu0 %964 }
 0x369   : > { %v969_v7 = vsub.f32 %v953_v52, %v965_v6  ;;  %v1701_v6 = vld [vmem:[%s1972_s3] sm:$0xff] }
 0x36b   : > { %v976_v8 = vmul.f32 1.442695, %v969_v7  ;;  %v1716_v7 = vld [vmem:[%s1981_s30 + $0x38] sm:$0xff] }
 0x36d   : > { %1757 = vpow2.f32 %v976_v8 }
 0x373   : > { %v1758_v9 = vpop.eup %1757 }
 0x374   : > { %v987_v10 = vsel %vm842_vm3, %v1758_v9, 0.0 }
 0x375   : > { %988 = vadd.xlane.f32.xlu1 %v987_v10  ;;  %v1715_v10 = vld [vmem:[%s1981_s30 + $0x30] sm:$0xff] }
 0x37b   : > { %v1742_v11 = vpop.permute.xlu0 %1741 }
 0x37c   : > { %v1744_v12 = vunpack.i.h.bf16 %v1742_v11  ;;  %v1743_v13 = vunpack.i.l.bf16 %v1742_v11 }
 0x37e   : > { %1019 = vmatpush.msra.mxu2 %v1743_v13  ;;  %1045 = vmatpush.msrb.mxu3 %v1744_v12  ;;  %v1714_v12 = vld [vmem:[%s1981_s30 + $0x28] sm:$0xff]  ;;  %v1713_v13 = vld [vmem:[%s1981_s30 + $0x20] sm:$0xff] }
 0x380   : > { %1146 = vmatpush.bf16.msra.mxu3 %v1700_v42 }
 0x384   : > { %1147 = vmatpush.bf16.msra.mxu3 %v1699_v43 }
 0x38e   : > { %1076 = vrot.lane.b32.xlu1 %v839_v38, %s1821_s2 }
 0x39b   : > { %v980_v14 = vpop.xlane.xlu1 %979 }
 0x39c   : > { %1759 = vrcp.f32 %v980_v14 }
 0x39e   : > { %v959_v15 = vpop.xlane.xlu2 %958 }
 0x39f   : > { %v967_v16 = vsub.f32 %v951_v62, %v959_v15  ;;  %v1707_v62 = vld [vmem:[%s1972_s3 + $0x30] sm:$0xff] }
 0x3a1   : > { %v972_v17 = vmul.f32 1.442695, %v967_v16  ;;  %v1712_v16 = vld [vmem:[%s1981_s30 + $0x18] sm:$0xff] }
 0x3a2   : > { %v1760_v18 = vpop.eup %1759 }
 0x3a3   : > { %1761 = vpow2.f32 %v972_v17  ;;  %v994_v19 = vmul.f32 %v1760_v18, %v1756_v59 }
 0x3a5   : > { %1605 = vmatmul.msk.f32.vlgmr.msra.gmra.mxu2 %vm842_vm3, %v994_v19  ;;  %v1711_v19 = vld [vmem:[%s1981_s30 + $0x10] sm:$0xff] }
 0x3a6   : > { %v962_v20 = vpop.xlane.xlu2 %961 }
 0x3a7   : > { %v968_v21 = vsub.f32 %v952_v4, %v962_v20  ;;  %v1703_v4 = vld [vmem:[%s1972_s3 + $0x10] sm:$0xff] }
 0x3a9   : > { %v1762_v22 = vpop.eup %1761  ;;  %v974_v23 = vmul.f32 1.442695, %v968_v21 }
 0x3aa   : > { %v981_v24 = vsel %vm842_vm3, %v1762_v22, 0.0 }
 0x3ab   : > { %1763 = vpow2.f32 %v974_v23  ;;  %982 = vadd.xlane.f32.xlu2 %v981_v24 }
 0x3b1   : > { %v1764_v25 = vpop.eup %1763 }
 0x3b2   : > { %v984_v26 = vsel %vm842_vm3, %v1764_v25, 0.0 }
 0x3b3   : > { %985 = vadd.xlane.f32.xlu2 %v984_v26 }
 0x3cb   : > { %1050 = vrot.lane.b32.xlu2 %v2024_v41, %s1821_s2  ;;  %s2159_s2 = sld [smem:[#allocation11_spill]] (!%p1682_p5) }
 0x3e8   : > { %v989_v27 = vpop.xlane.xlu1 %988 }
 0x3e9   : > { %1765 = vrcp.f32 %v989_v27 }
 0x3ef   : > { %v1766_v28 = vpop.eup %1765 }
 0x3f0   : > { %v997_v30 = vmul.f32 %v1766_v28, %v1758_v9 }
 0x400   : > { %v1077_v29 = vpop.permute.xlu1 %1076 }
 0x401   : > { %1097 = vmatpush.msrb.mxu2 %v1077_v29  ;;  %v1710_v29 = vld [vmem:[%s1981_s30 + $0x8] sm:$0xff] }
 0x402   : > { %1608 = vmatmul.msk.f32.vlgmr.msrb.gmra.mxu2 %vm842_vm3, %v997_v30  ;;  %v1709_v30 = vld [vmem:[%s1981_s30] sm:$0xff] }
 0x403   : > { %1339 = vmatpush.bf16.msra.mxu2 %v1716_v7 }
 0x407   : > { %1340 = vmatpush.bf16.msra.mxu2 %v1715_v10 }
 0x40b   : > { %1341 = vmatpush.bf16.msra.mxu2 %v1714_v12 }
 0x40f   : > { %1342 = vmatpush.bf16.msra.mxu2 %v1713_v13 }
 0x413   : > { %1343 = vmatpush.bf16.msra.mxu2 %v1712_v16 }
 0x417   : > { %1344 = vmatpush.bf16.msra.mxu2 %v1711_v19 }
 0x41b   : > { %1345 = vmatpush.bf16.msra.mxu2 %v1710_v29 }
 0x41e   : > { %v983_v31 = vpop.xlane.xlu2 %982 }
 0x41f   : > { %1767 = vrcp.f32 %v983_v31  ;;  %1346 = vmatpush.bf16.msra.mxu2 %v1709_v30  ;;  %v1751_v31 = vld [vmem:[%s698_s0] ss:$0 sm:$0xff]  ;;  %s2158_s0 = sld [smem:[#allocation10_spill]] (!%p1682_p5) }
 0x425   : > { %v1768_v32 = vpop.eup %1767 }
 0x426   : > { %v995_v33 = vmul.f32 %v1768_v32, %v1762_v22  ;;  %v986_v34 = vpop.xlane.xlu2 %985  ;;  %v1749_v22 = vld [vmem:[%s2157_s18] ss:$0 sm:$0xff] }
 0x427   : > { %1769 = vrcp.f32 %v986_v34 }
 0x428   : > { %1606 = vmatmul.msk.f32.vlgmr.msrb.gmra.mxu3 %vm842_vm3, %v995_v33  ;;  %v1021_v38 = vpop.f32.mrf.mxu2 }
 0x42d   : > { %v1770_v35 = vpop.eup %1769 }
 0x42e   : > { %v1051_v36 = vpop.permute.xlu2 %1050  ;;  %v996_v37 = vmul.f32 %v1770_v35, %v1764_v25  ;;  %v1750_v25 = vld [vmem:[%s690_s26] ss:$0 sm:$0xff] }
 0x42f   : > { %1071 = vmatpush.msra.mxu1 %v1051_v36 }
 0x430   : > { %1607 = vmatmul.msk.f32.vlgmr.msra.gmra.mxu1 %vm842_vm3, %v996_v37  ;;  %v1752_v37 = vld [vmem:[%s706_s21] ss:$0 sm:$0xff] }
 0x431   : > { %1260 = vmatpush.bf16.msrb.mxu1 %v1708_v57 }
 0x435   : > { %1261 = vmatpush.bf16.msrb.mxu1 %v1707_v62 }
 0x439   : > { %1262 = vmatpush.bf16.msrb.mxu1 %v1706_v63 }
 0x43d   : > { %1263 = vmatpush.bf16.msrb.mxu1 %v1705_v0 }
 0x441   : > { %1264 = vmatpush.bf16.msrb.mxu1 %v1704_v1 }
 0x445   : > { %1265 = vmatpush.bf16.msrb.mxu1 %v1703_v4 }
 0x449   : > { %1266 = vmatpush.bf16.msrb.mxu1 %v1702_v5 }
 0x44d   : > { %1267 = vmatpush.bf16.msrb.mxu1 %v1701_v6 }
 0x485   : > { %v1099_v39 = vpop.f32.mrf.mxu2 }
 0x486   : > { %1111 = vrot.lane.b32.xlu1 %v1099_v39, %s1822_s24 }
 0x4ab   : > { %v1047_v40 = vpop.f32.mrf.mxu3 }
 0x4ac   : > { %1103 = vrot.lane.b32.xlu0 %v1047_v40, %s1823_s4 }
 0x4ad   : > { %v1073_v41 = vpop.f32.mrf.mxu1 }
 0x4b4   : > { %1107 = vrot.lane.b32.xlu0 %v1073_v41, %s1824_s1 }
 0x4f8   : > { %v1112_v47 = vpop.permute.xlu1 %1111 }
 0x51e   : > { %v1104_v44 = vpop.permute.xlu0 %1103 }
 0x51f   : > { %v1114_v45 = vsel %vm842_vm3, %v1021_v38, %v1104_v44 }
 0x526   : > { %v1108_v46 = vpop.permute.xlu0 %1107 }
 0x527   : > { %v1116_v48 = vsel %vm1115_vm4, %v1114_v45, %v1108_v46 }
 0x528   : > { %v1118_v49 = vsel %vm1117_vm5, %v1116_v48, %v1112_v47 }
 0x529   : > { %v1119_v50 = vpack.c.bf16 %v1118_v49, %v1118_v49 }
 0x52b   : > { %1617 = vmatmul.msk.bf16.vlgmr.msra.gmra.mxu3 %vm1136_vm6, %v1119_v50 }
 0x5ae   : > { %v1149_v52 = vpop.f32.mrf.mxu3 }
 0x5af   : > { %v1153_v53 = vadd.f32 %v1149_v52, %v1991_v2 }
 0x5b1   : > { %v2062_v54 = vadd.f32 %v1748_v51, %v1153_v53 }
 0x5b3   : > { %v1161_v55 = vmul.f32 %v2062_v54, %v1993_v3 }
 0x5b5   : > { %1162 = vadd.xlane.f32.xlu2 %v1161_v55 }
 0x5b6   : > { %v1151_v56 = vpop.f32.mrf.mxu3 }
 0x628   : > { %v1163_v58 = vpop.xlane.xlu2 %1162 }
 0x629   : > { %v1164_v59 = vmul.f32 0.03125, %v1163_v58 }
 0x62b   : > { %v1165_v60 = vsub.f32 %v2062_v54, %v1164_v59 }
 0x62d   : > { %v1166_v2 = vmul.f32 %v1165_v60, %v1993_v3 }
 0x62f   : > { %v1167_v61 = vmul.f32 %v1166_v2, %v1166_v2 }
 0x631   : > { %1168 = vadd.xlane.f32.xlu0 %v1167_v61 }
 0x6a4   : > { %v1169_v8 = vpop.xlane.xlu0 %1168 }
 0x6a5   : > { %v1170_v9 = vmul.f32 0.03125, %v1169_v8 }
 0x6a7   : > { %v1171_v11 = vadd.f32 1e-05, %v1170_v9 }
 0x6a9   : > { %1771 = vrsqrt.f32 %v1171_v11  ;;  %vm1178_vm8 = vweird.f32 %v1171_v11 }
 0x6af   : > { %v1772_v14 = vpop.eup %1771 }
 0x6b0   : > { %v1173_v15 = vmul.f32 %v1772_v14, %v1171_v11  ;;  %vm1179_vm7 = vweird.f32 %v1772_v14 }
 0x6b1   : > { %vm1180_vm9 = vmor %vm1178_vm8, %vm1179_vm7 }
 0x6b2   : > { %v1174_v17 = vmul.f32 %v1772_v14, %v1173_v15 }
 0x6b4   : > { %v1175_v18 = vmul.f32 0.5, %v1174_v17 }
 0x6b6   : > { %v1176_v20 = vsub.f32 1.5, %v1175_v18 }
 0x6b8   : > { %v1177_v21 = vmul.f32 %v1772_v14, %v1176_v20 }
 0x6ba   : > { %v1181_v23 = vsel %vm1180_vm9, %v1772_v14, %v1177_v21 }
 0x6bb   : > { %v1182_v24 = vmul.f32 %v1181_v23, %v1166_v2 }
 0x6bd   : > { %v1186_v26 = vmul.f32 %v1749_v22, %v1182_v24 }
 0x6bf   : > { %v1190_v27 = vadd.f32 %v1750_v25, %v1186_v26 }
 0x6c1   : > { %v1191_v28 = vpack.c.bf16 %v1190_v27, %v1190_v27 }
 0x6c3   : > { %1268 = vmatmul.bf16.vlgmr.msrb.gmra.mxu1 %v1191_v28 }
 0x740   : > { %v1269_v32 = vpop.f32.mrf.mxu1 }
 0x741   : > { %v1270_v33 = vadd.f32 %v1751_v31, %v1269_v32 }
 0x743   : > { %v1273_v34 = vmax.f32 %v1270_v33, 0.0 }
 0x745   : > { %v1274_v35 = vpack.c.bf16 %v1273_v34, %v1273_v34 }
 0x747   : > { %1347 = vmatmul.bf16.vlgmr.msra.gmra.mxu2 %v1274_v35 }
 0x748   : > { %v1271_v36 = vpop.f32.mrf.mxu1 }
 0x7ca   : > { %v1348_v38 = vpop.f32.mrf.mxu2 }
 0x7cb   : > { %v1352_v39 = vadd.f32 %v1348_v38, %v2062_v54 }
 0x7cd   : > { %v1357_v40 = vadd.f32 %v1752_v37, %v1352_v39 }
 0x7ce   : > { %1362 = sbr.rel (%p1682_p5) target bundleno = 2274 (0x8e2), region = 96 }
 0x7cf   : > { %1358 = vst [vmem:[#allocation2] sm:$0xff] %v1357_v40 }
 0x7d2   : > { %v1350_v41 = vpop.f32.mrf.mxu2 }
 0x7d3   : > { %v1365_v42 = vmul.f32 %v1357_v40, %v1993_v3  ;;  %v1773_v57 = vld [vmem:[%s2158_s0] ss:$0 sm:$0xff] }
 0x7d4   : > { %v1774_v59 = vld [vmem:[%s2159_s2] ss:$0 sm:$0xff] }
 0x7d5   : > { %1366 = vadd.xlane.f32.xlu0 %v1365_v42 }
 0x848   : > { %v1367_v43 = vpop.xlane.xlu0 %1366 }
 0x849   : > { %v1368_v44 = vmul.f32 0.03125, %v1367_v43 }
 0x84b   : > { %v1369_v45 = vsub.f32 %v1357_v40, %v1368_v44 }
 0x84d   : > { %v1370_v46 = vmul.f32 %v1369_v45, %v1993_v3 }
 0x84f   : > { %v1371_v47 = vmul.f32 %v1370_v46, %v1370_v46 }
 0x851   : > { %1372 = vadd.xlane.f32.xlu0 %v1371_v47 }
 0x8c4   : > { %v1373_v48 = vpop.xlane.xlu0 %1372 }
 0x8c5   : > { %v1374_v49 = vmul.f32 0.03125, %v1373_v48 }
 0x8c7   : > { %v1375_v50 = vadd.f32 1e-05, %v1374_v49 }
 0x8c9   : > { %1775 = vrsqrt.f32 %v1375_v50  ;;  %vm1382_vm11 = vweird.f32 %v1375_v50 }
 0x8cf   : > { %v1776_v51 = vpop.eup %1775 }
 0x8d0   : > { %v1377_v52 = vmul.f32 %v1776_v51, %v1375_v50  ;;  %vm1383_vm10 = vweird.f32 %v1776_v51 }
 0x8d1   : > { %vm1384_vm12 = vmor %vm1382_vm11, %vm1383_vm10 }
 0x8d2   : > { %v1378_v53 = vmul.f32 %v1776_v51, %v1377_v52 }
 0x8d4   : > { %v1379_v54 = vmul.f32 0.5, %v1378_v53 }
 0x8d6   : > { %v1380_v55 = vsub.f32 1.5, %v1379_v54 }
 0x8d8   : > { %v1381_v56 = vmul.f32 %v1776_v51, %v1380_v55 }
 0x8da   : > { %v1385_v3 = vsel %vm1384_vm12, %v1776_v51, %v1381_v56 }
 0x8db   : > { %v1386_v58 = vmul.f32 %v1385_v3, %v1370_v46 }
 0x8dd   : > { %v1390_v60 = vmul.f32 %v1773_v57, %v1386_v58 }
 0x8df   : > { %v1394_v2 = vadd.f32 %v1774_v59, %v1390_v60 }
 0x8e1   : > { %1395 = vst [vmem:[#allocation3] sm:$0xff] %v1394_v2 }
 0x8e2 PF: > { %p1721_p6 = scmp.eq.s32.totalorder %s1922_s25, 1  ;;  %s1825_s24 = smov [#allocation3]  }
 0x8e3   : > { %s1402_s4 = sshll.u32 %s1825_s24, 4  ;;  %s2160_s23 = sld [smem:[#allocation14_spill]]  ;;  %s1403_s4 = int_to_ptr.vmem [resolvable:$true] %s1402_s4 }
 0x8e9   : > { %s1404_s3 = sshll.u32 %s2160_s23, 4  ;;  %s1405_s3 = int_to_ptr.hbm [resolvable:$true] %s1404_s3 }
 0x8ea   : > { %1718 = dma.vmem_to_hbm [thread:$0]  (%p1721_p6), %s1403_s4, 128, %s1405_s3, [#allocation4]  }
 0x8eb   : > { %1810 = dma.done.wait (%p1721_p6), [#allocation4], 128  }
 0x8ec   : > { %1812 = vsyncadd (%p1721_p6), [#allocation4], 4294967168 }
 0x8ed PF: > { %s2161_s17 = sld [smem:[#allocation6_spill]] }
 0x8f3   : > { %s28_s24 = sadd.s32 1, %s2161_s17  }
 0x8f4   : > { %p25_p7 = scmp.ge.s32.totalorder %s28_s24, 4  }
 0x8f6   :  { %27 = sbr.rel (!%p25_p7) target bundleno = 10 (0xa), region = 156 }
 0x8fb   :  { %1418 = vsyncpa [#allocation4], 1 }
 0x8fc   :  { %1420 = vsyncpa [#allocation4 + $0x1], 1 }

</bundles_post_ra>
